<compile_context>
chip_gen: v7x
topology: tpu7x:2x2x1
jax: 0.10.0
libtpu: 0.0.40
codegen_flags: <defaults>
</compile_context>

<pallas_src>
from functools import partial

import jax
import jax.numpy as jnp
from jax.experimental import pallas as pl
from jax.experimental.pallas import tpu as pltpu


def _round_up(n: int, m: int) -> int:
    return ((n + m - 1) // m) * m


def _mlp_fused_kernel(*refs, pre_relu_flags, use_scratch):
    """Fused MLP kernel.

    refs: (x_ref, w0_ref, b0_ref, ..., o_ref[, h_scratch])
      x_ref:  (tm, in_pad)            activation batch tile
      wi_ref: (in_pad_i, out_pad_i)   pre-transposed, zero-padded weight
      bi_ref: (1, out_pad_i)          zero-padded f32 bias
      o_ref:  (tm, out_pad_last)      output tile
    Intermediates live in VMEM/vregs; only the final result is stored to HBM.
    """
    x_ref = refs[0]
    if use_scratch:
        o_ref, h_scratch = refs[-2], refs[-1]
        wb_refs = refs[1:-2]
    else:
        o_ref, h_scratch = refs[-1], None
        wb_refs = refs[1:-1]

    num_layers = len(pre_relu_flags)
    h = x_ref[...]
    for i, pre_relu in enumerate(pre_relu_flags):
        w = wb_refs[2 * i][...]       # (in_pad, out_pad), already (in, out) layout
        b = wb_refs[2 * i + 1][...]   # (1, out_pad), f32
        if pre_relu:
            h = jnp.maximum(h, 0.0)
        # Weights were pre-cast in the wrapper; only cast the activation here.
        lhs = h.astype(w.dtype) if h.dtype != w.dtype else h
        h = jnp.dot(lhs, w, preferred_element_type=jnp.float32) + b
        if (h_scratch is not None) and (i != num_layers - 1):
            # Stage wide inter-layer activations through VMEM explicitly.
            op = h.shape[1]
            h_scratch[:, :op] = h
            h = h_scratch[:, :op]
    o_ref[...] = h.astype(o_ref.dtype)


def mlp_forward(x, params, final_relu: bool = False, *,
                batch_tile: int = 512, compute_dtype=None):
    """Pallas forward matching MLP.forward semantics.

    params: list of (weight (out, in), bias (out,)) in PyTorch layout.
    compute_dtype: e.g. jnp.bfloat16 for MXU-friendly inputs (f32 accumulation).
                   Default None keeps everything f32 (exact vs reference).
    """
    batch, in_f = x.shape
    num_layers = len(params)
    final_relu_layer = num_layers if final_relu else num_layers - 1
    pre_relu_flags = tuple(i < final_relu_layer for i in range(num_layers))

    # Feature widths per layer boundary, padded to lane-dense multiples of 128.
    feats = [in_f] + [int(w.shape[0]) for (w, _) in params]
    feats_pad = [_round_up(f, 128) for f in feats]
    in_pad, out_pad = feats_pad[0], feats_pad[-1]
    max_feat = max(feats_pad)
    itemsize = x.dtype.itemsize

    # ---- Batch tiling (no wrapper-side batch padding). ----
    sub = 8 if itemsize >= 4 else (16 if itemsize == 2 else 32)
    batch_tile = max(_round_up(batch_tile, sub), sub)
    if batch > batch_tile:
        tm = batch_tile
    elif batch >= 2 * sub:
        # >=2 grid steps so the "parallel" axis can shard across both v7x TCs.
        tm = min(_round_up((batch + 1) // 2, sub), batch_tile)
    else:
        tm = batch  # single tile equal to the full batch dim (valid layout)
    grid = (pl.cdiv(batch, tm),)

    # ---- Input: only pad the feature (lane) dim, and only if needed. ----
    x_p = x if in_pad == in_f else jnp.pad(x, ((0, 0), (0, in_pad - in_f)))

    # ---- Weights: pre-transpose to (in, out), zero-pad, single cast. ----
    wb_inputs, wb_specs = [], []
    w_bytes = 0
    for li, (w, b) in enumerate(params):
        out_f, in_f_l = w.shape
        assert in_f_l == feats[li], "layer input size mismatch"
        ip, op = feats_pad[li], feats_pad[li + 1]
        w_t = jnp.zeros((ip, op), w.dtype).at[:in_f_l, :out_f].set(w.T)
        if compute_dtype is not None:
            w_t = w_t.astype(compute_dtype)   # cast ONCE here, not per batch tile
        b_p = jnp.zeros((1, op), jnp.float32).at[0, :out_f].set(b.astype(jnp.float32))
        wb_inputs += [w_t, b_p]
        # Constant index_map -> single-buffer (double-buffering buys nothing).
        wb_specs += [
            pl.BlockSpec((ip, op), lambda i: (0, 0), pipeline_mode=pl.Buffered(1)),
            pl.BlockSpec((1, op), lambda i: (0, 0), pipeline_mode=pl.Buffered(1)),
        ]
        w_bytes += w_t.size * w_t.dtype.itemsize + b_p.size * b_p.dtype.itemsize

    # ---- Optional explicit VMEM staging for wide inter-layer activations. ----
    use_scratch = (num_layers > 1) and (tm * max_feat * 4 > (2 << 20))
    scratch_shapes = [pltpu.VMEM((tm, max_feat), jnp.float32)] if use_scratch else []

    # ---- VMEM budget derived from the resident set (capped for v7x 64 MiB). ----
    needed = (w_bytes                                  # single-buffered weights/biases
              + 2 * tm * in_pad * itemsize             # double-buffered input tile
              + 2 * tm * out_pad * itemsize            # double-buffered output tile
              + 2 * tm * max_feat * 4                  # live f32 working set
              + (tm * max_feat * 4 if use_scratch else 0))
    vmem_limit = int(min(max(needed * 3 // 2 + (4 << 20), 32 << 20), 64 << 20))

    # ---- Cost estimate for the surrounding XLA schedule. ----
    flops = 2 * batch * sum(feats[i] * feats[i + 1] for i in range(num_layers))
    bytes_accessed = (batch * in_f * itemsize + w_bytes
                      + batch * feats[-1] * itemsize)
    cost = pl.CostEstimate(flops=flops, transcendentals=0,
                           bytes_accessed=bytes_accessed)

    out = pl.pallas_call(
        partial(_mlp_fused_kernel,
                pre_relu_flags=pre_relu_flags,
                use_scratch=use_scratch),
        out_shape=jax.ShapeDtypeStruct((batch, out_pad), x.dtype),
        grid=grid,
        in_specs=[pl.BlockSpec((tm, in_pad), lambda i: (i, 0))] + wb_specs,
        out_specs=pl.BlockSpec((tm, out_pad), lambda i: (i, 0)),
        scratch_shapes=scratch_shapes,
        compiler_params=pltpu.CompilerParams(
            dimension_semantics=("parallel",),
            vmem_limit_bytes=vmem_limit),
        cost_estimate=cost,
    )(x_p, *wb_inputs)

    # Slice away lane padding outside the kernel (no batch padding was added).
    return out if out_pad == feats[-1] else out[:, :feats[-1]]


def init_mlp_params(key, layer_sizes):
    """Deterministic parameter init mimicking nn.Linear shapes.

    Returns list of (weight (out, in), bias (out,)) pairs, float32.
    """
    params = []
    for i in range(len(layer_sizes) - 1):
        in_f, out_f = int(layer_sizes[i]), int(layer_sizes[i + 1])
        key, kw, kb = jax.random.split(key, 3)
        bound = 1.0 / jnp.sqrt(in_f)
        w = jax.random.uniform(kw, (out_f, in_f), jnp.float32, -bound, bound)
        b = jax.random.uniform(kb, (out_f,), jnp.float32, -bound, bound)
        params.append((w, b))
    return params


def mlp_reference(x, params, final_relu: bool = False):
    """Pure-JAX reference (mirrors the PyTorch nn.Sequential)."""
    num_layers = len(params)
    final_relu_layer = num_layers if final_relu else num_layers - 1
    out = x
    for i, (w, b) in enumerate(params):
        if i < final_relu_layer:
            out = jnp.maximum(out, 0.0)
        out = out @ w.T + b
    return out


if __name__ == "__main__":
    key = jax.random.PRNGKey(0)
    layer_sizes = [32, 64, 16]   # small MLP: 32 -> 64 -> 16

    kx, kp, kx2 = jax.random.split(key, 3)
    params = init_mlp_params(kp, layer_sizes)

    # Case 1: batch = 8, single tile, final_relu=False (default).
    batch = 8
    x = jax.random.normal(kx, (batch, layer_sizes[0]), jnp.float32)
    out = jax.block_until_ready(mlp_forward(x, params, final_relu=False))
    ref = mlp_reference(x, params, final_relu=False)
    assert out.shape == (batch, layer_sizes[-1])
    assert jnp.allclose(out, ref, atol=1e-5, rtol=1e-5), "mismatch (batch=8)"

    # Case 2: batch = 20 -> two grid tiles (tm=16), partial last tile (masked
    # stores + garbage OOB rows that never touch valid rows), final_relu=True.
    batch2 = 20
    x2 = jax.random.normal(kx2, (batch2, layer_sizes[0]), jnp.float32)
    out2 = jax.block_until_ready(mlp_forward(x2, params, final_relu=True))
    ref2 = mlp_reference(x2, params, final_relu=True)
    assert out2.shape == (batch2, layer_sizes[-1])
    assert jnp.allclose(out2, ref2, atol=1e-5, rtol=1e-5), "mismatch (batch=20)"

    print("KERNEL_OK")
</pallas_src>

<mosaic_0001>
module attributes {stable_mosaic.version = 11 : i64} {
  func.func @_mlp_fused_kernel(%arg0: i32, %arg1: memref<8x128xf32, #tpu.memory_space<vmem>>, %arg2: memref<128x128xf32, #tpu.memory_space<vmem>>, %arg3: memref<1x128xf32, #tpu.memory_space<vmem>>, %arg4: memref<128x128xf32, #tpu.memory_space<vmem>>, %arg5: memref<1x128xf32, #tpu.memory_space<vmem>>, %arg6: memref<8x128xf32, #tpu.memory_space<vmem>>) attributes {dimension_semantics = [#tpu.dimension_semantics<parallel>], iteration_bounds = array<i64: 1>, scalar_prefetch = 0 : i64, scratch_operands = 0 : i64, tpu.core_type = #tpu.core_type<tc>, window_params = [{transform_indices = @transform_0, window_bounds = array<i64: 8, 128>}, {pipeline_mode = #tpu.pipeline_mode<synchronous>, transform_indices = @transform_1, window_bounds = array<i64: 128, 128>}, {pipeline_mode = #tpu.pipeline_mode<synchronous>, transform_indices = @transform_2, window_bounds = array<i64: 1, 128>}, {pipeline_mode = #tpu.pipeline_mode<synchronous>, transform_indices = @transform_3, window_bounds = array<i64: 128, 128>}, {pipeline_mode = #tpu.pipeline_mode<synchronous>, transform_indices = @transform_4, window_bounds = array<i64: 1, 128>}, {transform_indices = @transform_5, window_bounds = array<i64: 8, 128>}]} {
    %c0 = arith.constant 0 : index
    %c0_0 = arith.constant 0 : index
    %0 = vector.load %arg1[%c0, %c0_0] : memref<8x128xf32, #tpu.memory_space<vmem>>, vector<8x128xf32>
    %c0_1 = arith.constant 0 : index
    %c0_2 = arith.constant 0 : index
    %1 = vector.load %arg2[%c0_1, %c0_2] : memref<128x128xf32, #tpu.memory_space<vmem>>, vector<128x128xf32>
    %c0_3 = arith.constant 0 : index
    %c0_4 = arith.constant 0 : index
    %2 = vector.load %arg3[%c0_3, %c0_4] : memref<1x128xf32, #tpu.memory_space<vmem>>, vector<1x128xf32>
    %cst = arith.constant 0.000000e+00 : f32
    %3 = vector.broadcast %cst : f32 to vector<8x128xf32>
    %4 = arith.maximumf %0, %3 : vector<8x128xf32>
    %cst_5 = arith.constant dense<0.000000e+00> : vector<8x128xf32>
    %5 = tpu.matmul %4, %1, %cst_5 {dimension_numbers = #tpu.dot_dimension_numbers<[1], [0], [0], [1], [0, 0, 1, 1], [], []>} : vector<8x128xf32>, vector<128x128xf32>, vector<8x128xf32> -> vector<8x128xf32>
    %6 = vector.broadcast %2 : vector<1x128xf32> to vector<8x128xf32>
    %7 = arith.addf %5, %6 : vector<8x128xf32>
    %c0_6 = arith.constant 0 : index
    %c0_7 = arith.constant 0 : index
    %8 = vector.load %arg4[%c0_6, %c0_7] : memref<128x128xf32, #tpu.memory_space<vmem>>, vector<128x128xf32>
    %c0_8 = arith.constant 0 : index
    %c0_9 = arith.constant 0 : index
    %9 = vector.load %arg5[%c0_8, %c0_9] : memref<1x128xf32, #tpu.memory_space<vmem>>, vector<1x128xf32>
    %cst_10 = arith.constant dense<0.000000e+00> : vector<8x128xf32>
    %10 = tpu.matmul %7, %8, %cst_10 {dimension_numbers = #tpu.dot_dimension_numbers<[1], [0], [0], [1], [0, 0, 1, 1], [], []>} : vector<8x128xf32>, vector<128x128xf32>, vector<8x128xf32> -> vector<8x128xf32>
    %11 = vector.broadcast %9 : vector<1x128xf32> to vector<8x128xf32>
    %12 = arith.addf %10, %11 : vector<8x128xf32>
    %c0_11 = arith.constant 0 : index
    %c0_12 = arith.constant 0 : index
    %13 = vector.load %arg6[%c0_11, %c0_12] : memref<8x128xf32, #tpu.memory_space<vmem>>, vector<8x128xf32>
    tpu.vector_store %arg6[%c0_11, %c0_12], %12 {strides = array<i32>} : memref<8x128xf32, #tpu.memory_space<vmem>>, vector<8x128xf32>,
    return
  }
  func.func @transform_0(%arg0: i32) -> (i32, i32) {
    %c0_i32 = arith.constant 0 : i32
    %c0_i32_0 = arith.constant 0 : i32
    return %arg0, %c0_i32 : i32, i32
  }
  func.func @transform_1(%arg0: i32) -> (i32, i32) {
    %c0_i32 = arith.constant 0 : i32
    %c0_i32_0 = arith.constant 0 : i32
    %c0_i32_1 = arith.constant 0 : i32
    return %c0_i32, %c0_i32_0 : i32, i32
  }
  func.func @transform_2(%arg0: i32) -> (i32, i32) {
    %c0_i32 = arith.constant 0 : i32
    %c0_i32_0 = arith.constant 0 : i32
    %c0_i32_1 = arith.constant 0 : i32
    return %c0_i32, %c0_i32_0 : i32, i32
  }
  func.func @transform_3(%arg0: i32) -> (i32, i32) {
    %c0_i32 = arith.constant 0 : i32
    %c0_i32_0 = arith.constant 0 : i32
    %c0_i32_1 = arith.constant 0 : i32
    return %c0_i32, %c0_i32_0 : i32, i32
  }
  func.func @transform_4(%arg0: i32) -> (i32, i32) {
    %c0_i32 = arith.constant 0 : i32
    %c0_i32_0 = arith.constant 0 : i32
    %c0_i32_1 = arith.constant 0 : i32
    return %c0_i32, %c0_i32_0 : i32, i32
  }
  func.func @transform_5(%arg0: i32) -> (i32, i32) {
    %c0_i32 = arith.constant 0 : i32
    %c0_i32_0 = arith.constant 0 : i32
    return %arg0, %c0_i32 : i32, i32
  }
}

</mosaic_0001>

<bundles_post_ra>
// kernel: tpu_custom_call.1
= control target key start
LH: loop header
LB: loop body
LE: loop exit
PB: predicated region body
PF: predicated region fallthrough
CT: control target
= control target key end

     0   :  { %10 = vsyncpa [#allocation3], 0  ;;  %s637_s0 = inlined_call_operand.hbm [shape: f32[8,128], index: 0, kind: input, shape index: {}]   ;;  %s638_s1 = inlined_call_operand.hbm [shape: f32[128,128], index: 1, kind: input, shape index: {}]   ;;  %s639_s2 = inlined_call_operand.vmem [shape: f32[1,128], index: 2, kind: input, shape index: {}]   ;;  %s640_s3 = inlined_call_operand.hbm [shape: f32[128,128], index: 3, kind: input, shape index: {}]   ;;  %s641_s4 = inlined_call_operand.vmem [shape: f32[1,128], index: 4, kind: input, shape index: {}]   ;;  %s642_s5 = inlined_call_operand.hbm [shape: f32[8,128], index: 5, kind: output, shape index: {}]  }
   0x1   :  { %11 = vsyncpa [#allocation6], 0 }
   0x2   :  { %12 = vsyncpa [#allocation4], 0  ;;  %s522_s18 = smov [#allocation5]   ;;  %s428_s22 = scalar_lea.hbm %s638_s1, 2048 }
   0x3   :  { %s28_s19 = sshll.u32 %s522_s18, 4  ;;  %p429_p0 = scmp.ne.s32.totalorder %s638_s1, %s428_s22  ;;  %s29_s19 = int_to_ptr.vmem [resolvable:$true] %s28_s19 }
   0x4   :  { %p432_p1 = scmp.lt.u32.totalorder %s428_s22, %s638_s1 }
   0x6   :  { %p434_p2 = pnand %p432_p1, %p429_p0 }
   0x8   :  { %437 = shalt.err (!%p434_p2)
}
   0x9   :  { %s438_s27 = scalar_lea.vmem %s29_s19, 2048  ;;  %p443_p4 = scmp.lt.s32.totalorder %s29_s19, %s29_s19 }
   0xa   :  { %p439_p3 = scmp.ne.s32.totalorder %s29_s19, %s438_s27  ;;  %p444_p5 = scmp.lt.s32.totalorder %s438_s27, %s438_s27 }
   0xc   :  { %p445_p6 = por %p444_p5, %p443_p4 }
   0xe   :  { %p446_p7 = pnand %p445_p6, %p439_p3 }
  0x10   :  { %449 = shalt.err (!%p446_p7)
}
  0x11   :  { %s523_s28 = smov 128   ;;  %s524_s29 = smov 8  }
  0x12   :  { %34 = dma.hbm_to_vmem [thread:$0]  %s638_s1, 2048, %s29_s19, [#allocation6], %s523_s28, %s523_s28, %s524_s29  }
  0x13   :  { %s525_s7 = smov [#allocation2]   ;;  %s526_s9 = smov [#allocation7]  }
  0x14   :  { %s19_s8 = sshll.u32 %s525_s7, 4  ;;  %s42_s10 = sshll.u32 %s526_s9, 4  ;;  %s20_s8 = int_to_ptr.vmem [resolvable:$true] %s19_s8  ;;  %s43_s10 = int_to_ptr.vmem [resolvable:$true] %s42_s10 }
  0x15   :  { %s450_s13 = scalar_lea.hbm %s637_s0, 128 }
  0x16   :  { %p451_p8 = scmp.ne.s32.totalorder %s637_s0, %s450_s13  ;;  %p454_p9 = scmp.lt.u32.totalorder %s450_s13, %s637_s0 }
  0x18   :  { %p456_p10 = pnand %p454_p9, %p451_p8 }
  0x1a   :  { %459 = shalt.err (!%p456_p10)
}
  0x1b   :  { %s460_s1 = scalar_lea.vmem %s20_s8, 128  ;;  %p465_p12 = scmp.lt.s32.totalorder %s20_s8, %s20_s8 }
  0x1c   :  { %p461_p11 = scmp.ne.s32.totalorder %s20_s8, %s460_s1  ;;  %p466_p13 = scmp.lt.s32.totalorder %s460_s1, %s460_s1 }
  0x1e   :  { %p467_p0 = por %p466_p13, %p465_p12 }
  0x20   :  { %p468_p1 = pnand %p467_p0, %p461_p11 }
  0x22   :  { %471 = shalt.err (!%p468_p1)
}
  0x23   :  { %22 = dma.hbm_to_vmem [thread:$0]  %s637_s0, 128, %s20_s8, [#allocation3]  }
  0x24   :  { %s472_s22 = scalar_lea.hbm %s640_s3, 2048 }
  0x25   :  { %p473_p2 = scmp.ne.s32.totalorder %s640_s3, %s472_s22  ;;  %p476_p3 = scmp.lt.u32.totalorder %s472_s22, %s640_s3 }
  0x27   :  { %p478_p4 = pnand %p476_p3, %p473_p2 }
  0x29   :  { %481 = shalt.err (!%p478_p4)
}
  0x2a   :  { %s482_s27 = scalar_lea.vmem %s43_s10, 2048  ;;  %p487_p6 = scmp.lt.s32.totalorder %s43_s10, %s43_s10 }
  0x2b   :  { %p483_p5 = scmp.ne.s32.totalorder %s43_s10, %s482_s27  ;;  %p488_p7 = scmp.lt.s32.totalorder %s482_s27, %s482_s27 }
  0x2d   :  { %p489_p8 = por %p488_p7, %p487_p6 }
  0x2f   :  { %p490_p9 = pnand %p489_p8, %p483_p5 }
  0x31   :  { %493 = shalt.err (!%p490_p9)
}
  0x32   :  { %48 = dma.hbm_to_vmem [thread:$0]  %s640_s3, 2048, %s43_s10, [#allocation6], %s523_s28, %s523_s28, %s524_s29  }
  0x33   :  { %516 = dma.done.wait [#allocation3], 128  }
  0x34   :  { %517 = vsyncadd [#allocation3], 4294967168 }
  0x35   :  { %518 = dma.done.wait [#allocation6], 4096  }
  0x36   :  { %519 = vsyncadd [#allocation6], 4294963200  ;;  %v527_v0 = vmov 0.0|0.0   ;;  %vm528_vm0 = vmmov 0   ;;  %v529_v1 = vmov 0.0   ;;  %v61_v2 = vld [vmem:[#allocation5] sm:$0xff] }
  0x37   :  { %371 = vmatprep.subr.bf16.mxu0 %v527_v0  ;;  %333 = vmatprep.mubr.msk.f32.mxu0 %vm528_vm0, %v529_v1  ;;  %v62_v3 = vld [vmem:[#allocation5 + $0x8] sm:$0xff]  ;;  %v63_v4 = vld [vmem:[#allocation5 + $0x10] sm:$0xff]  ;;  %v64_v6 = vld [vmem:[#allocation5 + $0x18] sm:$0xff]  ;;  %s530_s7 = smov [#allocation8]  }
  0x38   :  { %395 = vmatprep.subr.bf16.mxu1 %v527_v0  ;;  %368 = vmatprep.mubr.msk.f32.mxu1 %vm528_vm0, %v529_v1  ;;  %v372_v5 = vpack.c.bf16 %v62_v3, %v61_v2  ;;  %v375_v7 = vpack.c.bf16 %v64_v6, %v63_v4  ;;  %v65_v8 = vld [vmem:[#allocation5 + $0x20] sm:$0xff]  ;;  %v66_v9 = vld [vmem:[#allocation5 + $0x28] sm:$0xff]  ;;  %v157_v12 = vld [vmem:[#allocation7 + $0x10] sm:$0xff]  ;;  %s255_s8 = sshll.u32 %s530_s7, 4  ;;  %s256_s8 = int_to_ptr.vmem [resolvable:$true] %s255_s8 }
  0x39   :  { %v155_v10 = vld [vmem:[#allocation7] sm:$0xff]  ;;  %v156_v11 = vld [vmem:[#allocation7 + $0x8] sm:$0xff]  ;;  %v158_v13 = vld [vmem:[#allocation7 + $0x18] sm:$0xff]  ;;  %v378_v14 = vpack.c.bf16 %v66_v9, %v65_v8  ;;  %s494_s9 = scalar_lea.vmem %s256_s8, 128  ;;  %p499_p11 = scmp.lt.s32.totalorder %s256_s8, %s256_s8 }
  0x3a   :  { %373 = vmatpush3.bf16.msra.mxu0 %v372_v5  ;;  %v396_v15 = vpack.c.bf16 %v156_v11, %v155_v10  ;;  %v67_v16 = vld [vmem:[#allocation5 + $0x30] sm:$0xff]  ;;  %v68_v17 = vld [vmem:[#allocation5 + $0x38] sm:$0xff]  ;;  %v399_v18 = vpack.c.bf16 %v158_v13, %v157_v12  ;;  %v159_v19 = vld [vmem:[#allocation7 + $0x20] sm:$0xff]  ;;  %p495_p10 = scmp.ne.s32.totalorder %s256_s8, %s494_s9  ;;  %p500_p12 = scmp.lt.s32.totalorder %s494_s9, %s494_s9 }
  0x3b   :  { %374 = vmatprep.subr.bf16.mxu0 %v527_v0  ;;  %v160_v20 = vld [vmem:[#allocation7 + $0x28] sm:$0xff]  ;;  %v381_v21 = vpack.c.bf16 %v68_v17, %v67_v16  ;;  %v69_v22 = vld [vmem:[#allocation5 + $0x40] sm:$0xff]  ;;  %v161_v25 = vld [vmem:[#allocation7 + $0x30] sm:$0xff] }
  0x3c   :  { %397 = vmatpush3.bf16.msra.mxu1 %v396_v15  ;;  %v70_v23 = vld [vmem:[#allocation5 + $0x48] sm:$0xff]  ;;  %v402_v24 = vpack.c.bf16 %v160_v20, %v159_v19  ;;  %v162_v26 = vld [vmem:[#allocation7 + $0x38] sm:$0xff]  ;;  %v71_v28 = vld [vmem:[#allocation5 + $0x50] sm:$0xff]  ;;  %p501_p13 = por %p500_p12, %p499_p11 }
  0x3d   :  { %398 = vmatprep.subr.bf16.mxu1 %v527_v0  ;;  %v384_v27 = vpack.c.bf16 %v70_v23, %v69_v22  ;;  %v72_v29 = vld [vmem:[#allocation5 + $0x58] sm:$0xff]  ;;  %v405_v30 = vpack.c.bf16 %v162_v26, %v161_v25  ;;  %v163_v31 = vld [vmem:[#allocation7 + $0x40] sm:$0xff]  ;;  %v164_v32 = vld [vmem:[#allocation7 + $0x48] sm:$0xff] }
  0x3e   :  { %376 = vmatpush3.bf16.msra.mxu0 %v375_v7  ;;  %v387_v33 = vpack.c.bf16 %v72_v29, %v71_v28  ;;  %v73_v34 = vld [vmem:[#allocation5 + $0x60] sm:$0xff]  ;;  %v74_v35 = vld [vmem:[#allocation5 + $0x68] sm:$0xff]  ;;  %v408_v36 = vpack.c.bf16 %v164_v32, %v163_v31  ;;  %v165_v37 = vld [vmem:[#allocation7 + $0x50] sm:$0xff]  ;;  %p502_p0 = pnand %p501_p13, %p495_p10 }
  0x3f   :  { %377 = vmatprep.subr.bf16.mxu0 %v527_v0  ;;  %v166_v38 = vld [vmem:[#allocation7 + $0x58] sm:$0xff]  ;;  %v390_v39 = vpack.c.bf16 %v74_v35, %v73_v34  ;;  %v75_v40 = vld [vmem:[#allocation5 + $0x70] sm:$0xff]  ;;  %v167_v43 = vld [vmem:[#allocation7 + $0x60] sm:$0xff] }
  0x40   :  { %400 = vmatpush3.bf16.msra.mxu1 %v399_v18  ;;  %v76_v41 = vld [vmem:[#allocation5 + $0x78] sm:$0xff]  ;;  %v411_v42 = vpack.c.bf16 %v166_v38, %v165_v37  ;;  %v168_v44 = vld [vmem:[#allocation7 + $0x68] sm:$0xff]  ;;  %v169_v49 = vld [vmem:[#allocation7 + $0x70] sm:$0xff] }
  0x41   :  { %401 = vmatprep.subr.bf16.mxu1 %v527_v0  ;;  %v393_v45 = vpack.c.bf16 %v76_v41, %v75_v40  ;;  %v60_v46 = vld [vmem:[#allocation2] sm:$0xff]  ;;  %v414_v47 = vpack.c.bf16 %v168_v44, %v167_v43 }
  0x42   :  { %379 = vmatpush3.bf16.msra.mxu0 %v378_v14  ;;  %v78_v48 = vmax.f32 %v60_v46, 0.0  ;;  %v170_v50 = vld [vmem:[#allocation7 + $0x78] sm:$0xff] }
  0x43   :  { %380 = vmatprep.subr.bf16.mxu0 %v527_v0  ;;  %v417_v51 = vpack.c.bf16 %v170_v50, %v169_v49  ;;  %v265_v52 = vld [vmem:[%s639_s2] ss:$0 sm:$0xff] }
  0x44   :  { %403 = vmatpush3.bf16.msra.mxu1 %v402_v24  ;;  %v266_v56 = vld [vmem:[%s641_s4] ss:$0 sm:$0xff] }
  0x45   :  { %404 = vmatprep.subr.bf16.mxu1 %v527_v0 }
  0x46   :  { %382 = vmatpush3.bf16.msra.mxu0 %v381_v21 }
  0x47   :  { %383 = vmatprep.subr.bf16.mxu0 %v527_v0 }
  0x48   :  { %406 = vmatpush3.bf16.msra.mxu1 %v405_v30 }
  0x49   :  { %407 = vmatprep.subr.bf16.mxu1 %v527_v0 }
  0x4a   :  { %385 = vmatpush3.bf16.msra.mxu0 %v384_v27 }
  0x4b   :  { %386 = vmatprep.subr.bf16.mxu0 %v527_v0 }
  0x4c   :  { %409 = vmatpush3.bf16.msra.mxu1 %v408_v36 }
  0x4d   :  { %410 = vmatprep.subr.bf16.mxu1 %v527_v0 }
  0x4e   :  { %388 = vmatpush3.bf16.msra.mxu0 %v387_v33 }
  0x4f   :  { %389 = vmatprep.subr.bf16.mxu0 %v527_v0 }
  0x50   :  { %412 = vmatpush3.bf16.msra.mxu1 %v411_v42 }
  0x51   :  { %413 = vmatprep.subr.bf16.mxu1 %v527_v0 }
  0x52   :  { %391 = vmatpush3.bf16.msra.mxu0 %v390_v39 }
  0x53   :  { %392 = vmatprep.subr.bf16.mxu0 %v527_v0 }
  0x54   :  { %415 = vmatpush3.bf16.msra.mxu1 %v414_v47 }
  0x55   :  { %416 = vmatprep.subr.bf16.mxu1 %v527_v0 }
  0x56   :  { %394 = vmatpush3.bf16.msra.mxu0 %v393_v45 }
  0x58   :  { %418 = vmatpush3.bf16.msra.mxu1 %v417_v51 }
  0x59   :  { %334 = vmatmul.mubr.f32.vlgmr.msra.gmra.mrb[0].mxu0 %v78_v48 }
 0x12c   :  { %v151_v53 = vpop.f32.mrb[0].mxu0 }
 0x12d   :  { %v152_v54 = vadd.f32 %v265_v52, %v151_v53  ;;  %v335_v55 = vpop.f32.mrb[1].mxu0 }
 0x12f   :  { %369 = vmatmul.mubr.f32.vlgmr.msra.gmra.mrb[0].mxu1 %v152_v54 }
 0x202   :  { %v244_v57 = vpop.f32.mrb[0].mxu1 }
 0x203   :  { %v245_v58 = vadd.f32 %v266_v56, %v244_v57  ;;  %v370_v59 = vpop.f32.mrb[1].mxu1 }
 0x205   :  { %248 = vst [vmem:[#allocation8] sm:$0xff] %v245_v58 }
 0x206   :  { %505 = shalt.err (!%p502_p0)
}
 0x207   :  { %s506_s11 = scalar_lea.hbm %s642_s5, 128 }
 0x208   :  { %p507_p1 = scmp.ne.s32.totalorder %s642_s5, %s506_s11  ;;  %p510_p2 = scmp.lt.u32.totalorder %s506_s11, %s642_s5 }
 0x20a   :  { %p512_p3 = pnand %p510_p2, %p507_p1 }
 0x20c   :  { %515 = shalt.err (!%p512_p3)
}
 0x20d   :  { %258 = dma.vmem_to_hbm [thread:$0]  %s256_s8, 128, %s642_s5, [#allocation4]  }
 0x20e   :  { %520 = dma.done.wait [#allocation4], 128  }
 0x20f   :  { %521 = vsyncadd [#allocation4], 4294967168 }
 0x210   :  { %262 = vsyncpa [#allocation3], 1 }
 0x211   :  { %263 = vsyncpa [#allocation6], 1 }
 0x212   :  { %264 = vsyncpa [#allocation4], 1 }

</bundles_post_ra>
